<compile_context>
chip_gen: v7x
topology: tpu7x:2x2x1
jax: 0.10.0
libtpu: 0.0.40
codegen_flags: <defaults>
</compile_context>

<pallas_src>
import functools
import math

import jax
import jax.numpy as jnp
from jax import lax
from jax.experimental import pallas as pl
from jax.experimental.pallas import tpu as pltpu


def _round_up(v: int, m: int) -> int:
    return ((v + m - 1) // m) * m


def _pad2(arr, rows: int, cols: int):
    pr, pc = rows - arr.shape[0], cols - arr.shape[1]
    if pr or pc:
        arr = jnp.pad(arr, ((0, pr), (0, pc)))
    return arr


# Keep a full copy of LoRA A resident in VMEM if it is at most this large.
_A_RESIDENT_MAX_BYTES = 4 * 1024 * 1024


def _device_config():
    """Per-generation tile caps + scoped-VMEM limit (bytes) + TC count."""
    try:
        kind = jax.devices()[0].device_kind.lower()
    except Exception:
        kind = ""
    if "v5" in kind:
        # v5e: weakest HBM (~0.82 TB/s) -> 512 tiles to leave the roofline.
        return dict(tm=512, tn=512, tk=1024, vmem=64 << 20, cores=1)
    if "v6" in kind:
        # v6e: 918 TF/s vs 1.4 TB/s -> go big; raise scoped VMEM past 32 MiB.
        return dict(tm=1024, tn=1024, tk=1024, vmem=96 << 20, cores=1)
    if "v7" in kind:
        # v7x: 3.2 TB/s HBM but only 64 MiB VMEM/TC -> 512 tiles suffice.
        return dict(tm=512, tn=512, tk=1024, vmem=48 << 20, cores=2)
    return dict(tm=512, tn=512, tk=1024, vmem=64 << 20, cores=1)


def _lora_kernel(x_ref, w_ref, b_ref, a_ref, bs_ref, o_ref, acc_ref, ax_ref,
                 *, tk, a_resident, gate_stage1):
    """Fused (x @ W^T + b) + (x @ A^T) @ (scaling*B)^T with K-axis reduction.

    x_ref:  (tm, tk)          bf16  activation tile
    w_ref:  (tn, tk)          bf16  pretrained weight tile, native (out, in)
    b_ref:  (1,  tn)          f32   bias tile
    a_ref:  (r_pad, k_pad|tk) bf16  LoRA A (resident full-K or streamed tile)
    bs_ref: (tn, r_pad)       bf16  LoRA B with scaling pre-folded, (out, r)
    o_ref:  (tm, tn)                output tile (activation dtype)
    acc_ref:(tm, tn)          f32   main-path accumulator (persists over K)
    ax_ref: (tm, r_pad)       f32   x @ A^T accumulator (persists over K,
                                    and over the j axis when gate_stage1)
    """
    j = pl.program_id(1)
    k = pl.program_id(2)

    @pl.when(k == 0)
    def _init_acc():
        acc_ref[...] = jnp.zeros_like(acc_ref)

    x = x_ref[...]

    # Frozen pretrained path: contract the K (lane) axis of both operands.
    acc_ref[...] += lax.dot_general(
        x, w_ref[...],
        dimension_numbers=(((1,), (1,)), ((), ())),
        preferred_element_type=jnp.float32)

    # LoRA stage 1 (low-rank projection x @ A^T), also a K reduction.
    def _stage1_init():
        ax_ref[...] = jnp.zeros_like(ax_ref)

    def _stage1():
        if a_resident:
            a_blk = a_ref[:, pl.ds(pl.multiple_of(k * tk, tk), tk)]
        else:
            a_blk = a_ref[...]
        ax_ref[...] += lax.dot_general(
            x, a_blk,
            dimension_numbers=(((1,), (1,)), ((), ())),
            preferred_element_type=jnp.float32)

    if gate_stage1:
        # ax depends only on (i, k): compute it once at j == 0 and reuse it
        # for every j tile (requires the j axis to iterate sequentially).
        pl.when(jnp.logical_and(j == 0, k == 0))(_stage1_init)
        pl.when(j == 0)(_stage1)
    else:
        pl.when(k == 0)(_stage1_init)
        _stage1()

    @pl.when(k == pl.num_programs(2) - 1)
    def _finalize():
        # LoRA stage 2 (scaling already folded into bs) + bias, applied
        # exactly once per (i, j) output tile.
        lora = lax.dot_general(
            ax_ref[...].astype(jnp.bfloat16), bs_ref[...],
            dimension_numbers=(((1,), (1,)), ((), ())),
            preferred_element_type=jnp.float32)
        o_ref[...] = (acc_ref[...] + lora + b_ref[...]).astype(o_ref.dtype)


def prepare_linear_lora(w_pre, b_pre, lora_a, lora_b, *, lora_alpha, r,
                        tn_max=None, tk_max=None):
    """One-time pack of the frozen/adapter weights (pad + bf16 cast + scaling
    fold).  Do this at load time, not per forward call."""
    cfg = _device_config()
    tn_max = cfg["tm" if False else "tn"] if tn_max is None else tn_max
    tk_max = cfg["tk"] if tk_max is None else tk_max

    out_dim, in_dim = w_pre.shape
    scaling = float(lora_alpha) / float(r)

    tn = min(tn_max, _round_up(out_dim, 128))
    tk = min(tk_max, _round_up(in_dim, 128))
    n_pad = _round_up(out_dim, tn)
    k_pad = _round_up(in_dim, tk)

    # Rank padding: lane-dense (128) when A is small enough to pin in VMEM
    # for the whole kernel; otherwise the minimal 16-sublane padding so the
    # streamed A does not blow up HBM traffic.
    a_resident = (_round_up(r, 128) * k_pad * 2) <= _A_RESIDENT_MAX_BYTES
    r_pad = _round_up(r, 128) if a_resident else _round_up(r, 16)

    packed = {
        "w": _pad2(w_pre, n_pad, k_pad).astype(jnp.bfloat16),               # (out, in)
        "a": _pad2(lora_a, r_pad, k_pad).astype(jnp.bfloat16),              # (r,   in)
        "bs": _pad2(lora_b * scaling, n_pad, r_pad).astype(jnp.bfloat16),   # (out, r)
        "bias": _pad2(b_pre.reshape(1, out_dim).astype(jnp.float32), 1, n_pad),
        "meta": dict(out_dim=out_dim, in_dim=in_dim, tn=tn, tk=tk,
                     n_pad=n_pad, k_pad=k_pad, r_pad=r_pad,
                     a_resident=a_resident, vmem=cfg["vmem"],
                     cores=cfg["cores"], tm_max=cfg["tm"]),
    }
    return packed


def linear_lora_forward(x, packed, *, tm_max=None):
    """x: (..., in_dim); `packed` from prepare_linear_lora."""
    meta = packed["meta"]
    out_dim, in_dim = meta["out_dim"], meta["in_dim"]
    tn, tk = meta["tn"], meta["tk"]
    n_pad, k_pad, r_pad = meta["n_pad"], meta["k_pad"], meta["r_pad"]
    a_resident = meta["a_resident"]
    tm_max = meta["tm_max"] if tm_max is None else tm_max

    out_dtype = x.dtype
    *lead, xd = x.shape
    assert xd == in_dim, "input feature dim mismatch"
    m = math.prod(lead) if lead else 1

    tm = min(tm_max, _round_up(m, 16))
    m_pad = _round_up(m, tm)

    # v7x has 2 TensorCores: make sure the parallel i axis has >= 2 tiles
    # when the problem allows so both cores get work.
    if meta["cores"] > 1:
        while m_pad // tm < 2 and tm >= 512:
            tm //= 2
            m_pad = _round_up(m, tm)

    grid_i = m_pad // tm
    grid_j = n_pad // tn
    grid_k = k_pad // tk

    # Stage-1 gating requires a sequentially-iterated j axis.  On v7x, if
    # only the j axis can feed both cores, keep it parallel and recompute the
    # (cheap) stage-1 per j tile instead.
    gate_stage1 = True
    if meta["cores"] > 1 and grid_i == 1 and grid_j > 1:
        gate_stage1 = False
    dim_sem = ("parallel",
               "arbitrary" if gate_stage1 else "parallel",
               "arbitrary")

    # Activation: bf16 MXU operand, zero padding is semantically inert
    # (padded K contributes 0; padded M/N rows are sliced off below).
    x2 = _pad2(x.reshape(m, in_dim), m_pad, k_pad).astype(jnp.bfloat16)

    if a_resident:
        a_spec = pl.BlockSpec((r_pad, k_pad), lambda i, j, k: (0, 0))
    else:
        a_spec = pl.BlockSpec((r_pad, tk), lambda i, j, k: (0, k))

    out_itemsize = jnp.dtype(out_dtype).itemsize
    flops = int(2 * m_pad * n_pad * k_pad
                + 2 * m_pad * r_pad * k_pad * (1 if gate_stage1 else grid_j)
                + 2 * m_pad * n_pad * r_pad)
    bytes_accessed = int(
        grid_j * m_pad * k_pad * 2                                   # x re-read per j
        + grid_i * n_pad * k_pad * 2                                 # W re-read per i
        + (1 if a_resident else grid_i * grid_j) * r_pad * k_pad * 2 # A
        + grid_i * n_pad * r_pad * 2                                 # B re-read per i
        + grid_i * n_pad * 4                                         # bias
        + m_pad * n_pad * out_itemsize)                              # output

    kernel = functools.partial(_lora_kernel, tk=tk, a_resident=a_resident,
                               gate_stage1=gate_stage1)

    out = pl.pallas_call(
        kernel,
        out_shape=jax.ShapeDtypeStruct((m_pad, n_pad), out_dtype),
        grid_spec=pltpu.PrefetchScalarGridSpec(
            num_scalar_prefetch=0,
            grid=(grid_i, grid_j, grid_k),
            in_specs=[
                pl.BlockSpec((tm, tk), lambda i, j, k: (i, k)),        # x
                pl.BlockSpec((tn, tk), lambda i, j, k: (j, k)),        # W (out, in)
                pl.BlockSpec((1, tn), lambda i, j, k: (0, j)),         # bias
                a_spec,                                                # lora_A
                pl.BlockSpec((tn, r_pad), lambda i, j, k: (j, 0)),     # lora_B*scaling
            ],
            out_specs=pl.BlockSpec((tm, tn), lambda i, j, k: (i, j)),
            scratch_shapes=[
                pltpu.VMEM((tm, tn), jnp.float32),      # main accumulator
                pltpu.VMEM((tm, r_pad), jnp.float32),   # x @ A^T accumulator
            ],
        ),
        compiler_params=pltpu.CompilerParams(
            dimension_semantics=dim_sem,
            vmem_limit_bytes=meta["vmem"]),
        cost_estimate=pl.CostEstimate(
            flops=flops, transcendentals=0, bytes_accessed=bytes_accessed),
    )(x2, packed["w"], packed["bias"], packed["a"], packed["bs"])

    if m_pad != m or n_pad != out_dim:
        out = out[:m, :out_dim]
    return out.reshape(*lead, out_dim)


if __name__ == "__main__":
    # Small shapes consistent with the module: x is (batch, seq, in_dim).
    batch, seq, in_dim, out_dim, r, lora_alpha = 2, 8, 32, 64, 8, 16

    key = jax.random.PRNGKey(0)
    k_x, k_w, k_b, k_a, k_lb = jax.random.split(key, 5)

    x = jax.random.normal(k_x, (batch, seq, in_dim), dtype=jnp.float32)
    # Deterministic synthetic params (shapes follow nn.Linear conventions).
    w_pre = jax.random.normal(k_w, (out_dim, in_dim), dtype=jnp.float32) * 0.1
    b_pre = jax.random.normal(k_b, (out_dim,), dtype=jnp.float32) * 0.1
    lora_a = jax.random.normal(k_a, (r, in_dim), dtype=jnp.float32) * 0.1
    # The module inits lora_B to zero; use small nonzero values here so the
    # low-rank path is actually exercised numerically.
    lora_b = jax.random.normal(k_lb, (out_dim, r), dtype=jnp.float32) * 0.1

    packed = prepare_linear_lora(w_pre, b_pre, lora_a, lora_b,
                                 lora_alpha=lora_alpha, r=r)
    y = linear_lora_forward(x, packed)
    y = jax.block_until_ready(y)

    # Pure-JAX f32 reference; tolerances loosened for bf16 MXU inputs.
    scaling = lora_alpha / r
    y_ref = (x @ w_pre.T + b_pre) + ((x @ lora_a.T) @ lora_b.T) * scaling
    assert y.shape == (batch, seq, out_dim)
    assert jnp.allclose(y, y_ref, atol=5e-2, rtol=5e-2), "mismatch vs reference"

    print("KERNEL_OK")
</pallas_src>

<mosaic_0001>
module attributes {stable_mosaic.version = 11 : i64} {
  func.func @_lora_kernel(%arg0: i32, %arg1: i32, %arg2: i32, %arg3: memref<16x128xbf16, #tpu.memory_space<vmem>>, %arg4: memref<128x128xbf16, #tpu.memory_space<vmem>>, %arg5: memref<1x128xf32, #tpu.memory_space<vmem>>, %arg6: memref<128x128xbf16, #tpu.memory_space<vmem>>, %arg7: memref<128x128xbf16, #tpu.memory_space<vmem>>, %arg8: memref<16x128xf32, #tpu.memory_space<vmem>>, %arg9: memref<16x128xf32, #tpu.memory_space<vmem>>, %arg10: memref<16x128xf32, #tpu.memory_space<vmem>>) attributes {dimension_semantics = [#tpu.dimension_semantics<parallel>, #tpu.dimension_semantics<arbitrary>, #tpu.dimension_semantics<arbitrary>], iteration_bounds = array<i64: 1, 1, 1>, scalar_prefetch = 0 : i64, scratch_operands = 2 : i64, tpu.core_type = #tpu.core_type<tc>, window_params = [{transform_indices = @transform_0, window_bounds = array<i64: 16, 128>}, {transform_indices = @transform_1, window_bounds = array<i64: 128, 128>}, {transform_indices = @transform_2, window_bounds = array<i64: 1, 128>}, {pipeline_mode = #tpu.pipeline_mode<synchronous>, transform_indices = @transform_3, window_bounds = array<i64: 128, 128>}, {transform_indices = @transform_4, window_bounds = array<i64: 128, 128>}, {transform_indices = @transform_5, window_bounds = array<i64: 16, 128>}]} {
    %c0_i32 = arith.constant 0 : i32
    %0 = arith.cmpi eq, %arg2, %c0_i32 : i32
    %1 = arith.extui %0 : i1 to i32
    %c0_i32_0 = arith.constant 0 : i32
    %2 = arith.cmpi ne, %1, %c0_i32_0 : i32
    scf.if %2 {
      %cst_15 = arith.constant 0.000000e+00 : f32
      %20 = vector.broadcast %cst_15 : f32 to vector<16x128xf32>
      %c0_16 = arith.constant 0 : index
      %c0_17 = arith.constant 0 : index
      %21 = vector.load %arg9[%c0_16, %c0_17] : memref<16x128xf32, #tpu.memory_space<vmem>>, vector<16x128xf32>
      tpu.vector_store %arg9[%c0_16, %c0_17], %20 {strides = array<i32>} : memref<16x128xf32, #tpu.memory_space<vmem>>, vector<16x128xf32>,
    } else {
    }
    %c0 = arith.constant 0 : index
    %c0_1 = arith.constant 0 : index
    %3 = vector.load %arg3[%c0, %c0_1] : memref<16x128xbf16, #tpu.memory_space<vmem>>, vector<16x128xbf16>
    %c0_2 = arith.constant 0 : index
    %c0_3 = arith.constant 0 : index
    %4 = vector.load %arg9[%c0_2, %c0_3] : memref<16x128xf32, #tpu.memory_space<vmem>>, vector<16x128xf32>
    %c0_4 = arith.constant 0 : index
    %c0_5 = arith.constant 0 : index
    %5 = vector.load %arg4[%c0_4, %c0_5] : memref<128x128xbf16, #tpu.memory_space<vmem>>, vector<128x128xbf16>
    %cst = arith.constant dense<0.000000e+00> : vector<16x128xf32>
    %6 = tpu.matmul %3, %5, %cst {dimension_numbers = #tpu.dot_dimension_numbers<[1], [1], [0], [0], [0, 0, 1, 0], [], []>} : vector<16x128xbf16>, vector<128x128xbf16>, vector<16x128xf32> -> vector<16x128xf32>
    %7 = arith.addf %4, %6 : vector<16x128xf32>
    %c0_6 = arith.constant 0 : index
    %c0_7 = arith.constant 0 : index
    %8 = vector.load %arg9[%c0_6, %c0_7] : memref<16x128xf32, #tpu.memory_space<vmem>>, vector<16x128xf32>
    tpu.vector_store %arg9[%c0_6, %c0_7], %7 {strides = array<i32>} : memref<16x128xf32, #tpu.memory_space<vmem>>, vector<16x128xf32>,
    %c0_i32_8 = arith.constant 0 : i32
    %9 = arith.cmpi eq, %arg1, %c0_i32_8 : i32
    %c0_i32_9 = arith.constant 0 : i32
    %10 = arith.cmpi eq, %arg2, %c0_i32_9 : i32
    %11 = arith.andi %9, %10 : i1
    %12 = arith.extui %11 : i1 to i32
    %c0_i32_10 = arith.constant 0 : i32
    %13 = arith.cmpi ne, %12, %c0_i32_10 : i32
    scf.if %13 {
      %cst_15 = arith.constant 0.000000e+00 : f32
      %20 = vector.broadcast %cst_15 : f32 to vector<16x128xf32>
      %c0_16 = arith.constant 0 : index
      %c0_17 = arith.constant 0 : index
      %21 = vector.load %arg10[%c0_16, %c0_17] : memref<16x128xf32, #tpu.memory_space<vmem>>, vector<16x128xf32>
      tpu.vector_store %arg10[%c0_16, %c0_17], %20 {strides = array<i32>} : memref<16x128xf32, #tpu.memory_space<vmem>>, vector<16x128xf32>,
    } else {
    }
    %c0_i32_11 = arith.constant 0 : i32
    %14 = arith.cmpi eq, %arg1, %c0_i32_11 : i32
    %15 = arith.extui %14 : i1 to i32
    %c0_i32_12 = arith.constant 0 : i32
    %16 = arith.cmpi ne, %15, %c0_i32_12 : i32
    scf.if %16 {
      %c128_i32 = arith.constant 128 : i32
      %20 = arith.muli %arg2, %c128_i32 : i32
      %21 = tpu.assume_multiple %20, 128 : i32
      %c0_15 = arith.constant 0 : index
      %22 = arith.index_cast %21 : i32 to index
      %23 = vector.load %arg6[%c0_15, %22] : memref<128x128xbf16, #tpu.memory_space<vmem>>, vector<128x128xbf16>
      %c0_16 = arith.constant 0 : index
      %c0_17 = arith.constant 0 : index
      %24 = vector.load %arg10[%c0_16, %c0_17] : memref<16x128xf32, #tpu.memory_space<vmem>>, vector<16x128xf32>
      %cst_18 = arith.constant dense<0.000000e+00> : vector<16x128xf32>
      %25 = tpu.matmul %3, %23, %cst_18 {dimension_numbers = #tpu.dot_dimension_numbers<[1], [1], [0], [0], [0, 0, 1, 0], [], []>} : vector<16x128xbf16>, vector<128x128xbf16>, vector<16x128xf32> -> vector<16x128xf32>
      %26 = arith.addf %24, %25 : vector<16x128xf32>
      %c0_19 = arith.constant 0 : index
      %c0_20 = arith.constant 0 : index
      %27 = vector.load %arg10[%c0_19, %c0_20] : memref<16x128xf32, #tpu.memory_space<vmem>>, vector<16x128xf32>
      tpu.vector_store %arg10[%c0_19, %c0_20], %26 {strides = array<i32>} : memref<16x128xf32, #tpu.memory_space<vmem>>, vector<16x128xf32>,
    } else {
    }
    %c0_i32_13 = arith.constant 0 : i32
    %17 = arith.cmpi eq, %arg2, %c0_i32_13 : i32
    %18 = arith.extui %17 : i1 to i32
    %c0_i32_14 = arith.constant 0 : i32
    %19 = arith.cmpi ne, %18, %c0_i32_14 : i32
    scf.if %19 {
      %c0_15 = arith.constant 0 : index
      %c0_16 = arith.constant 0 : index
      %20 = vector.load %arg10[%c0_15, %c0_16] : memref<16x128xf32, #tpu.memory_space<vmem>>, vector<16x128xf32>
      %21 = arith.truncf %20 : vector<16x128xf32> to vector<16x128xbf16>
      %c0_17 = arith.constant 0 : index
      %c0_18 = arith.constant 0 : index
      %22 = vector.load %arg7[%c0_17, %c0_18] : memref<128x128xbf16, #tpu.memory_space<vmem>>, vector<128x128xbf16>
      %cst_19 = arith.constant dense<0.000000e+00> : vector<16x128xf32>
      %23 = tpu.matmul %21, %22, %cst_19 {dimension_numbers = #tpu.dot_dimension_numbers<[1], [1], [0], [0], [0, 0, 1, 0], [], []>} : vector<16x128xbf16>, vector<128x128xbf16>, vector<16x128xf32> -> vector<16x128xf32>
      %c0_20 = arith.constant 0 : index
      %c0_21 = arith.constant 0 : index
      %24 = vector.load %arg9[%c0_20, %c0_21] : memref<16x128xf32, #tpu.memory_space<vmem>>, vector<16x128xf32>
      %25 = arith.addf %24, %23 : vector<16x128xf32>
      %c0_22 = arith.constant 0 : index
      %c0_23 = arith.constant 0 : index
      %26 = vector.load %arg5[%c0_22, %c0_23] : memref<1x128xf32, #tpu.memory_space<vmem>>, vector<1x128xf32>
      %27 = vector.broadcast %26 : vector<1x128xf32> to vector<16x128xf32>
      %28 = arith.addf %25, %27 : vector<16x128xf32>
      %c0_24 = arith.constant 0 : index
      %c0_25 = arith.constant 0 : index
      %29 = vector.load %arg8[%c0_24, %c0_25] : memref<16x128xf32, #tpu.memory_space<vmem>>, vector<16x128xf32>
      tpu.vector_store %arg8[%c0_24, %c0_25], %28 {strides = array<i32>} : memref<16x128xf32, #tpu.memory_space<vmem>>, vector<16x128xf32>,
    } else {
    }
    return
  }
  func.func @transform_0(%arg0: i32, %arg1: i32, %arg2: i32) -> (i32, i32) {
    %c0_i32 = arith.constant 0 : i32
    return %arg0, %arg2 : i32, i32
  }
  func.func @transform_1(%arg0: i32, %arg1: i32, %arg2: i32) -> (i32, i32) {
    %c0_i32 = arith.constant 0 : i32
    return %arg1, %arg2 : i32, i32
  }
  func.func @transform_2(%arg0: i32, %arg1: i32, %arg2: i32) -> (i32, i32) {
    %c0_i32 = arith.constant 0 : i32
    %c0_i32_0 = arith.constant 0 : i32
    return %c0_i32, %arg1 : i32, i32
  }
  func.func @transform_3(%arg0: i32, %arg1: i32, %arg2: i32) -> (i32, i32) {
    %c0_i32 = arith.constant 0 : i32
    %c0_i32_0 = arith.constant 0 : i32
    %c0_i32_1 = arith.constant 0 : i32
    return %c0_i32, %c0_i32_0 : i32, i32
  }
  func.func @transform_4(%arg0: i32, %arg1: i32, %arg2: i32) -> (i32, i32) {
    %c0_i32 = arith.constant 0 : i32
    %c0_i32_0 = arith.constant 0 : i32
    return %arg1, %c0_i32 : i32, i32
  }
  func.func @transform_5(%arg0: i32, %arg1: i32, %arg2: i32) -> (i32, i32) {
    %c0_i32 = arith.constant 0 : i32
    return %arg0, %arg1 : i32, i32
  }
}

</mosaic_0001>

<bundles_post_ra>
// kernel: tpu_custom_call.1
= control target key start
LH: loop header
LB: loop body
LE: loop exit
PB: predicated region body
PF: predicated region fallthrough
CT: control target
= control target key end

     0   :  { %10 = vsyncpa [#allocation5], 0  ;;  %s939_s0 = inlined_call_operand.hbm [shape: bf16[16,128], index: 0, kind: input, shape index: {}]   ;;  %s940_s1 = inlined_call_operand.hbm [shape: bf16[128,128], index: 1, kind: input, shape index: {}]   ;;  %s941_s2 = inlined_call_operand.hbm [shape: f32[1,128], index: 2, kind: input, shape index: {}]   ;;  %s942_s3 = inlined_call_operand.hbm [shape: bf16[128,128], index: 3, kind: input, shape index: {}]   ;;  %s943_s4 = inlined_call_operand.hbm [shape: bf16[128,128], index: 4, kind: input, shape index: {}]   ;;  %s944_s5 = inlined_call_operand.hbm [shape: f32[16,128], index: 5, kind: output, shape index: {}]  }
   0x1   :  { %11 = vsyncpa [#allocation8], 0 }
   0x2   :  { %12 = vsyncpa [#allocation11], 0 }
   0x3   :  { %13 = vsyncpa [#allocation6], 0  ;;  %s776_s18 = smov [#allocation7]   ;;  %s777_s20 = smov [#allocation10]  }
   0x4   :  { %s31_s19 = sshll.u32 %s776_s18, 4  ;;  %s53_s21 = sshll.u32 %s777_s20, 4  ;;  %s32_s19 = int_to_ptr.vmem [resolvable:$true] %s31_s19  ;;  %s818_s21 = int_to_ptr.vmem [resolvable:$true] %s53_s21 }
   0x5   :  { %s636_s24 = scalar_lea.hbm %s940_s1, 1024 }
   0x6   :  { %p637_p0 = scmp.ne.s32.totalorder %s940_s1, %s636_s24  ;;  %p640_p1 = scmp.lt.u32.totalorder %s636_s24, %s940_s1 }
   0x8   :  { %p642_p2 = pnand %p640_p1, %p637_p0 }
   0xa   :  { %645 = shalt.err (!%p642_p2)
}
   0xb   :  { %s646_s29 = scalar_lea.vmem %s32_s19, 1024  ;;  %p651_p4 = scmp.lt.s32.totalorder %s32_s19, %s32_s19 }
   0xc   :  { %p647_p3 = scmp.ne.s32.totalorder %s32_s19, %s646_s29  ;;  %p652_p5 = scmp.lt.s32.totalorder %s646_s29, %s646_s29 }
   0xe   :  { %p653_p6 = por %p652_p5, %p651_p4 }
  0x10   :  { %p654_p7 = pnand %p653_p6, %p647_p3 }
  0x12   :  { %657 = shalt.err (!%p654_p7)
}
  0x13   :  { %s778_s30 = smov 64   ;;  %s779_s6 = smov 4  }
  0x14   :  { %37 = dma.hbm_to_vmem [thread:$0]  %s940_s1, 1024, %s32_s19, [#allocation8], %s778_s30, %s778_s30, %s779_s6  }
  0x15   :  { %s658_s11 = scalar_lea.hbm %s942_s3, 1024 }
  0x16   :  { %p659_p8 = scmp.ne.s32.totalorder %s942_s3, %s658_s11  ;;  %p662_p9 = scmp.lt.u32.totalorder %s658_s11, %s942_s3 }
  0x18   :  { %p664_p10 = pnand %p662_p9, %p659_p8 }
  0x1a   :  { %667 = shalt.err (!%p664_p10)
}
  0x1b   :  { %s668_s16 = scalar_lea.vmem %s818_s21, 1024  ;;  %p673_p12 = scmp.lt.s32.totalorder %s818_s21, %s818_s21 }
  0x1c   :  { %p669_p11 = scmp.ne.s32.totalorder %s818_s21, %s668_s16  ;;  %p674_p13 = scmp.lt.s32.totalorder %s668_s16, %s668_s16 }
  0x1e   :  { %p675_p0 = por %p674_p13, %p673_p12 }
  0x20   :  { %p676_p1 = pnand %p675_p0, %p669_p11 }
  0x22   :  { %679 = shalt.err (!%p676_p1)
}
  0x23   :  { %59 = dma.hbm_to_vmem [thread:$0]  %s942_s3, 1024, %s818_s21, [#allocation11], %s778_s30, %s778_s30, %s779_s6  }
  0x24   :  { %s780_s18 = smov [#allocation4]   ;;  %s781_s20 = smov [#allocation9]  }
  0x25   :  { %s19_s19 = sshll.u32 %s780_s18, 4  ;;  %s44_s22 = sshll.u32 %s781_s20, 4  ;;  %s20_s19 = int_to_ptr.vmem [resolvable:$true] %s19_s19  ;;  %s45_s22 = int_to_ptr.vmem [resolvable:$true] %s44_s22 }
  0x26   :  { %s680_s25 = scalar_lea.hbm %s939_s0, 128 }
  0x27   :  { %p681_p2 = scmp.ne.s32.totalorder %s939_s0, %s680_s25  ;;  %p684_p3 = scmp.lt.u32.totalorder %s680_s25, %s939_s0 }
  0x29   :  { %p686_p4 = pnand %p684_p3, %p681_p2 }
  0x2b   :  { %689 = shalt.err (!%p686_p4)
}
  0x2c   :  { %s690_s3 = scalar_lea.vmem %s20_s19, 128  ;;  %p695_p6 = scmp.lt.s32.totalorder %s20_s19, %s20_s19 }
  0x2d   :  { %p691_p5 = scmp.ne.s32.totalorder %s20_s19, %s690_s3  ;;  %p696_p7 = scmp.lt.s32.totalorder %s690_s3, %s690_s3 }
  0x2f   :  { %p697_p8 = por %p696_p7, %p695_p6 }
  0x31   :  { %p698_p9 = pnand %p697_p8, %p691_p5 }
  0x33   :  { %701 = shalt.err (!%p698_p9)
}
  0x34   :  { %25 = dma.hbm_to_vmem [thread:$0]  %s939_s0, 128, %s20_s19, [#allocation5], %s778_s30, %s778_s30, %s779_s6  }
  0x35   :  { %s702_s10 = scalar_lea.hbm %s941_s2, 16 }
  0x36   :  { %p703_p10 = scmp.ne.s32.totalorder %s941_s2, %s702_s10  ;;  %p706_p11 = scmp.lt.u32.totalorder %s702_s10, %s941_s2 }
  0x38   :  { %p708_p12 = pnand %p706_p11, %p703_p10 }
  0x3a   :  { %711 = shalt.err (!%p708_p12)
}
  0x3b   :  { %s712_s15 = scalar_lea.vmem %s45_s22, 16  ;;  %s716_s16 = scalar_lea.vmem %s45_s22, 32 }
  0x3c   :  { %p713_p13 = scmp.ne.s32.totalorder %s45_s22, %s712_s15  ;;  %p717_p0 = scmp.lt.s32.totalorder %s45_s22, %s45_s22 }
  0x3d   :  { %p718_p1 = scmp.lt.s32.totalorder %s716_s16, %s712_s15 }
  0x3f   :  { %p719_p2 = por %p718_p1, %p717_p0 }
  0x41   :  { %p720_p3 = pnand %p719_p2, %p713_p13 }
  0x43   :  { %723 = shalt.err (!%p720_p3)
}
  0x44   :  { %47 = dma.hbm_to_vmem [thread:$0]  %s941_s2, 16, %s45_s22, [#allocation8]  }
  0x45   :  { %s782_s17 = smov [#allocation12]   ;;  %s724_s23 = scalar_lea.hbm %s943_s4, 1024 }
  0x46   :  { %s65_s18 = sshll.u32 %s782_s17, 4  ;;  %p725_p4 = scmp.ne.s32.totalorder %s943_s4, %s724_s23  ;;  %s66_s18 = int_to_ptr.vmem [resolvable:$true] %s65_s18 }
  0x47   :  { %p728_p5 = scmp.lt.u32.totalorder %s724_s23, %s943_s4 }
  0x49   :  { %p730_p6 = pnand %p728_p5, %p725_p4 }
  0x4b   :  { %733 = shalt.err (!%p730_p6)
}
  0x4c   :  { %s734_s28 = scalar_lea.vmem %s66_s18, 1024  ;;  %p739_p8 = scmp.lt.s32.totalorder %s66_s18, %s66_s18 }
  0x4d   :  { %p735_p7 = scmp.ne.s32.totalorder %s66_s18, %s734_s28  ;;  %p740_p9 = scmp.lt.s32.totalorder %s734_s28, %s734_s28 }
  0x4f   :  { %p741_p10 = por %p740_p9, %p739_p8 }
  0x51   :  { %p742_p11 = pnand %p741_p10, %p735_p7 }
  0x53   :  { %745 = shalt.err (!%p742_p11)
}
  0x54   :  { %71 = dma.hbm_to_vmem [thread:$0]  %s943_s4, 1024, %s66_s18, [#allocation11], %s778_s30, %s778_s30, %s779_s6  }
  0x55   :  { %768 = dma.done.wait [#allocation5], 128  }
  0x56   :  { %769 = vsyncadd [#allocation5], 4294967168 }
  0x57   :  { %770 = dma.done.wait [#allocation8], 1040  }
  0x58   :  { %771 = vsyncadd [#allocation8], 4294966256 }
  0x59   :  { %772 = dma.done.wait [#allocation11], 2048  }
  0x5a   :  { %773 = vsyncadd [#allocation11], 4294965248  ;;  %v783_v0 = vmov 0.0   ;;  %vm784_vm0 = vmmov 0   ;;  %v611_v1 = vld [vmem:[#allocation10] sm:$0xff]   ;;  %v612_v2 = vld [vmem:[#allocation10 + $0x8] sm:$0xff]  }
  0x5b   :  { %559 = vmatprep.subr.bf16.mxu1 %v783_v0  ;;  %575 = vmatprep.mubr.msk.bf16.mxu1 %vm784_vm0, %v783_v0  ;;  %v620_v3 = vld [vmem:[#allocation7] sm:$0xff]   ;;  %v613_v4 = vld [vmem:[#allocation10 + $0x10] sm:$0xff]   ;;  %v621_v5 = vld [vmem:[#allocation7 + $0x8] sm:$0xff]   ;;  %s785_s4 = smov [#allocation13]  }
  0x5c   :  { %539 = vmatprep.subr.bf16.mxu0 %v783_v0  ;;  %555 = vmatprep.mubr.msk.bf16.mxu0 %vm784_vm0, %v783_v0  ;;  %v614_v6 = vld [vmem:[#allocation10 + $0x18] sm:$0xff]   ;;  %v622_v7 = vld [vmem:[#allocation7 + $0x10] sm:$0xff]   ;;  %v615_v8 = vld [vmem:[#allocation10 + $0x20] sm:$0xff]   ;;  %s470_s30 = sshll.u32 %s785_s4, 4  ;;  %s471_s30 = int_to_ptr.vmem [resolvable:$true] %s470_s30 }
  0x5d   :  { %560 = vmatpush3.bf16.xpose.msra.mxu1 %v611_v1  ;;  %540 = vmatpush3.bf16.xpose.msra.mxu0 %v620_v3  ;;  %v623_v9 = vld [vmem:[#allocation7 + $0x18] sm:$0xff]   ;;  %v616_v10 = vld [vmem:[#allocation10 + $0x28] sm:$0xff]   ;;  %v624_v11 = vld [vmem:[#allocation7 + $0x20] sm:$0xff]   ;;  %s746_s6 = scalar_lea.vmem %s471_s30, 256  ;;  %p751_p13 = scmp.lt.s32.totalorder %s471_s30, %s471_s30 }
  0x5e   :  { %561 = vmatprep.subr.bf16.mxu1 %v783_v0  ;;  %541 = vmatprep.subr.bf16.mxu0 %v783_v0  ;;  %v617_v12 = vld [vmem:[#allocation10 + $0x30] sm:$0xff]   ;;  %v625_v13 = vld [vmem:[#allocation7 + $0x28] sm:$0xff]   ;;  %v618_v14 = vld [vmem:[#allocation10 + $0x38] sm:$0xff]   ;;  %p747_p12 = scmp.ne.s32.totalorder %s471_s30, %s746_s6  ;;  %p752_p0 = scmp.lt.s32.totalorder %s746_s6, %s746_s6 }
  0x5f   :  { %v626_v15 = vld [vmem:[#allocation7 + $0x30] sm:$0xff]   ;;  %v619_v16 = vld [vmem:[#allocation4] sm:$0xff]   ;;  %v628_v18 = vld [vmem:[#allocation12] sm:$0xff]  }
  0x60   :  { %v627_v17 = vld [vmem:[#allocation7 + $0x38] sm:$0xff]   ;;  %v629_v19 = vld [vmem:[#allocation12 + $0x8] sm:$0xff]   ;;  %v632_v22 = vld [vmem:[#allocation12 + $0x20] sm:$0xff]   ;;  %p753_p1 = por %p752_p0, %p751_p13 }
  0x61   :  { %v630_v20 = vld [vmem:[#allocation12 + $0x10] sm:$0xff]   ;;  %v631_v21 = vld [vmem:[#allocation12 + $0x18] sm:$0xff]   ;;  %v633_v23 = vld [vmem:[#allocation12 + $0x28] sm:$0xff]  }
  0x62   :  { %v634_v24 = vld [vmem:[#allocation12 + $0x30] sm:$0xff]   ;;  %v635_v25 = vld [vmem:[#allocation12 + $0x38] sm:$0xff]   ;;  %p754_p2 = pnand %p753_p1, %p747_p12 }
  0x63   :  { %v511_v36 = vld [vmem:[#allocation9] ss:$0 sm:$0xff] }
  0x65   :  { %562 = vmatpush3.bf16.xpose.msra.mxu1 %v612_v2  ;;  %542 = vmatpush3.bf16.xpose.msra.mxu0 %v621_v5 }
  0x66   :  { %563 = vmatprep.subr.bf16.mxu1 %v783_v0  ;;  %543 = vmatprep.subr.bf16.mxu0 %v783_v0 }
  0x6d   :  { %564 = vmatpush3.bf16.xpose.msra.mxu1 %v613_v4  ;;  %544 = vmatpush3.bf16.xpose.msra.mxu0 %v622_v7 }
  0x6e   :  { %565 = vmatprep.subr.bf16.mxu1 %v783_v0  ;;  %545 = vmatprep.subr.bf16.mxu0 %v783_v0 }
  0x75   :  { %566 = vmatpush3.bf16.xpose.msra.mxu1 %v614_v6  ;;  %546 = vmatpush3.bf16.xpose.msra.mxu0 %v623_v9 }
  0x76   :  { %567 = vmatprep.subr.bf16.mxu1 %v783_v0  ;;  %547 = vmatprep.subr.bf16.mxu0 %v783_v0 }
  0x7d   :  { %568 = vmatpush3.bf16.xpose.msra.mxu1 %v615_v8  ;;  %548 = vmatpush3.bf16.xpose.msra.mxu0 %v624_v11 }
  0x7e   :  { %569 = vmatprep.subr.bf16.mxu1 %v783_v0  ;;  %549 = vmatprep.subr.bf16.mxu0 %v783_v0 }
  0x85   :  { %570 = vmatpush3.bf16.xpose.msra.mxu1 %v616_v10  ;;  %550 = vmatpush3.bf16.xpose.msra.mxu0 %v625_v13 }
  0x86   :  { %571 = vmatprep.subr.bf16.mxu1 %v783_v0  ;;  %551 = vmatprep.subr.bf16.mxu0 %v783_v0 }
  0x8d   :  { %572 = vmatpush3.bf16.xpose.msra.mxu1 %v617_v12  ;;  %552 = vmatpush3.bf16.xpose.msra.mxu0 %v626_v15 }
  0x8e   :  { %573 = vmatprep.subr.bf16.mxu1 %v783_v0  ;;  %553 = vmatprep.subr.bf16.mxu0 %v783_v0 }
  0x95   :  { %574 = vmatpush3.bf16.xpose.msra.mxu1 %v618_v14  ;;  %554 = vmatpush3.bf16.xpose.msra.mxu0 %v627_v17 }
  0x96   :  { %579 = vmatprep.subr.bf16.mxu0 %v783_v0 }
  0x9c   :  { %576 = vmatmul.mubr.bf16.vlgmr.msra.gmra.mrb[0].mxu1 %v619_v16  ;;  %556 = vmatmul.mubr.bf16.vlgmr.msra.gmra.mrb[0].mxu0 %v619_v16 }
  0x9d   :  { %580 = vmatpush3.bf16.xpose.msra.mxu0 %v628_v18  ;;  %595 = vmatprep.mubr.msk.bf16.mxu0 %vm784_vm0, %v783_v0 }
  0x9e   :  { %581 = vmatprep.subr.bf16.mxu0 %v783_v0 }
  0xa5   :  { %582 = vmatpush3.bf16.xpose.msra.mxu0 %v629_v19 }
  0xa6   :  { %583 = vmatprep.subr.bf16.mxu0 %v783_v0 }
  0xad   :  { %584 = vmatpush3.bf16.xpose.msra.mxu0 %v630_v20 }
  0xae   :  { %585 = vmatprep.subr.bf16.mxu0 %v783_v0 }
  0xb5   :  { %586 = vmatpush3.bf16.xpose.msra.mxu0 %v631_v21 }
  0xb6   :  { %587 = vmatprep.subr.bf16.mxu0 %v783_v0 }
  0xbd   :  { %588 = vmatpush3.bf16.xpose.msra.mxu0 %v632_v22 }
  0xbe   :  { %589 = vmatprep.subr.bf16.mxu0 %v783_v0 }
  0xc5   :  { %590 = vmatpush3.bf16.xpose.msra.mxu0 %v633_v23 }
  0xc6   :  { %591 = vmatprep.subr.bf16.mxu0 %v783_v0 }
  0xcd   :  { %592 = vmatpush3.bf16.xpose.msra.mxu0 %v634_v24 }
  0xce   :  { %593 = vmatprep.subr.bf16.mxu0 %v783_v0 }
  0xd5   :  { %594 = vmatpush3.bf16.xpose.msra.mxu0 %v635_v25 }
 0x16f   :  { %v328_v26 = vpop.f32.mrb[0].mxu1  ;;  %v202_v31 = vpop.f32.mrb[0].mxu0 }
 0x170   :  { %v577_v27 = vpop.f32.mrb[1].mxu1  ;;  %v557_v32 = vpop.f32.mrb[1].mxu0 }
 0x171   :  { %v331_v28 = vpop.f32.mrb[2].mxu1  ;;  %v205_v33 = vpop.f32.mrb[2].mxu0 }
 0x172   :  { %v344_v29 = vpack.c.bf16 %v331_v28, %v328_v26  ;;  %v578_v30 = vpop.f32.mrb[3].mxu1  ;;  %v558_v34 = vpop.f32.mrb[3].mxu0 }
 0x174   :  { %596 = vmatmul.mubr.bf16.vlgmr.msra.gmra.mrb[4].mxu0 %v344_v29 }
 0x247   :  { %v443_v35 = vpop.f32.mrb[4].mxu0 }
 0x248   :  { %v452_v37 = vadd.f32 %v443_v35, %v202_v31  ;;  %v597_v38 = vpop.f32.mrb[5].mxu0 }
 0x249   :  { %v446_v39 = vpop.f32.mrb[6].mxu0 }
 0x24a   :  { %v461_v40 = vadd.f32 %v511_v36, %v452_v37  ;;  %v453_v41 = vadd.f32 %v446_v39, %v205_v33  ;;  %v598_v42 = vpop.f32.mrb[7].mxu0 }
 0x24c   :  { %463 = vst [vmem:[#allocation13] sm:$0xff] %v461_v40  ;;  %v462_v43 = vadd.f32 %v511_v36, %v453_v41 }
 0x24e   :  { %464 = vst [vmem:[#allocation13 + $0x8] sm:$0xff] %v462_v43 }
 0x24f   :  { %757 = shalt.err (!%p754_p2)
}
 0x250   :  { %s758_s21 = scalar_lea.hbm %s944_s5, 256 }
 0x251   :  { %p759_p3 = scmp.ne.s32.totalorder %s944_s5, %s758_s21  ;;  %p762_p4 = scmp.lt.u32.totalorder %s758_s21, %s944_s5 }
 0x253   :  { %p764_p5 = pnand %p762_p4, %p759_p3 }
 0x255   :  { %767 = shalt.err (!%p764_p5)
}
 0x256   :  { %s786_s11 = smov 128   ;;  %s787_s12 = smov 8  }
 0x257   :  { %476 = dma.vmem_to_hbm [thread:$0]  %s471_s30, 256, %s944_s5, [#allocation6], %s786_s11, %s786_s11, %s787_s12  }
 0x258   :  { %774 = dma.done.wait [#allocation6], 256  }
 0x259   :  { %775 = vsyncadd [#allocation6], 4294967040 }
 0x25a   :  { %480 = vsyncpa [#allocation5], 1 }
 0x25b   :  { %481 = vsyncpa [#allocation8], 1 }
 0x25c   :  { %482 = vsyncpa [#allocation11], 1 }
 0x25d   :  { %483 = vsyncpa [#allocation6], 1 }

</bundles_post_ra>
